<compile_context>
chip_gen: v6e
topology: v6e:2x2x1
jax: 0.10.0
libtpu: 0.0.40
codegen_flags: <defaults>
</compile_context>

<pallas_src>
import functools

import jax
import jax.numpy as jnp
from jax import lax
from jax.experimental import pallas as pl
from jax.experimental.pallas import tpu as pltpu


# ------------------------------ tiling helpers --------------------------------
def _pick_tile(dim, target, align, min_accept):
    """Choose a tile for `dim`.  Returns (tile, padded_dim).

    Small dims get full-extent blocks (always legal).  Otherwise pick the
    largest `align`-multiple divisor of `dim` that is <= target and
    >= min_accept.  If none exists, pad `dim` up to a multiple of the aligned
    target rather than degrading to a tiny tile (tiny tiles explode the grid
    into thousands of ~0.35us steps).
    """
    if dim <= target:
        return dim, dim
    t = max((target // align) * align, align)
    cand = t
    while cand >= min_accept:
        if dim % cand == 0:
            return cand, dim
        cand -= align
    padded = -(-dim // t) * t
    return t, padded


def _attn_tile(n, target):
    """Largest multiple-of-8 divisor of n that is <= target (full if small)."""
    if n <= target:
        return n
    t = (target // 8) * 8
    while t >= 8:
        if n % t == 0:
            return t
        t -= 8
    # TODO(synk): pad / mask remainder kv blocks instead of this fallback.
    return n


# ----------------------------- tiled linear (GEMM) ---------------------------
def _linear_kernel(x_ref, w_ref, b_ref, o_ref, acc_ref):
    # o = x @ w + b, accumulated in f32 VMEM scratch across the K grid axis.
    k = pl.program_id(2)

    @pl.when(k == 0)
    def _():
        acc_ref[...] = jnp.zeros_like(acc_ref)

    acc_ref[...] += jnp.dot(x_ref[...], w_ref[...],
                            preferred_element_type=jnp.float32)

    @pl.when(k == pl.num_programs(2) - 1)
    def _():
        o_ref[...] = (acc_ref[...] + b_ref[...]).astype(o_ref.dtype)


def pallas_linear(x2d, w, b, *, out_dtype=None,
                  tm=512, tn=512, tk=1024,
                  vmem_budget=40 * 1024 * 1024):
    """y = x2d @ w + b.  x2d: (M, K), w: (K, N), b: (N,) (bias in f32).

    Tiles target 512/512/1024 and are shrunk until the double-buffered working
    set fits `vmem_budget`, so the same config is safe on v5e/v6e (128 MiB VMEM)
    and v7x (64 MiB).  Tiles stay multiples of 128 on lane dims (MXU-friendly on
    all generations); sublane alignment is 16 for bf16, 8 for f32.
    """
    M, K = x2d.shape
    K2, N = w.shape
    assert K2 == K
    if out_dtype is None:
        out_dtype = x2d.dtype
    in_bytes = x2d.dtype.itemsize
    out_bytes = jnp.dtype(out_dtype).itemsize
    m_align = 16 if in_bytes < 4 else 8

    # Cap tile targets against the VMEM budget (double-buffered inputs/outputs
    # plus the f32 accumulator).
    def _ws(bm, bn, bk):
        return (2 * (bm * bk + bk * bn) * in_bytes + 2 * bn * 4
                + 2 * bm * bn * out_bytes + bm * bn * 4)

    while _ws(tm, tn, tk) > vmem_budget:
        if tk > 256:
            tk //= 2
        elif tn > 256:
            tn //= 2
        elif tm > 128:
            tm //= 2
        else:
            break

    tm, Mp = _pick_tile(M, tm, m_align, 64)
    tn, Np = _pick_tile(N, tn, 128, 128)
    tk, Kp = _pick_tile(K, tk, 128, 128)

    # Zero-padding keeps the math exact (padded rows/cols contribute nothing).
    xp = x2d if (Mp == M and Kp == K) else jnp.pad(x2d, ((0, Mp - M), (0, Kp - K)))
    wp = w if (Kp == K and Np == N) else jnp.pad(w, ((0, Kp - K), (0, Np - N)))
    bp = b if Np == N else jnp.pad(b, (0, Np - N))
    b2d = bp.reshape(1, Np).astype(jnp.float32)

    cost = pl.CostEstimate(
        flops=2 * M * K * N,
        transcendentals=0,
        bytes_accessed=in_bytes * (M * K + K * N) + out_bytes * M * N + 4 * N,
    )

    out = pl.pallas_call(
        _linear_kernel,
        out_shape=jax.ShapeDtypeStruct((Mp, Np), out_dtype),
        grid_spec=pltpu.PrefetchScalarGridSpec(
            num_scalar_prefetch=0,
            grid=(Mp // tm, Np // tn, Kp // tk),
            in_specs=[
                pl.BlockSpec((tm, tk), lambda i, j, k: (i, k)),
                pl.BlockSpec((tk, tn), lambda i, j, k: (k, j)),
                pl.BlockSpec((1, tn), lambda i, j, k: (0, j)),
            ],
            out_specs=pl.BlockSpec((tm, tn), lambda i, j, k: (i, j)),
            scratch_shapes=[pltpu.VMEM((tm, tn), jnp.float32)],
        ),
        compiler_params=pltpu.CompilerParams(
            dimension_semantics=("parallel", "parallel", "arbitrary"),
            vmem_limit_bytes=48 * 1024 * 1024,
        ),
        cost_estimate=cost,
    )(xp, wp, b2d)

    if Mp != M or Np != N:
        out = out[:M, :N]
    return out


# ------------------------ flash-tiled attention kernel ------------------------
def _flash_attn_kernel(q_ref, k_ref, v_ref, o_ref, m_sc, l_sc, acc_sc,
                       *, inv_scale, approx_recip):
    """One (batch*head, q-tile, kv-tile) step of online-softmax attention.

    Reproduces the module's quirky scaling: logits are UNscaled; the softmax
    output is divided by sqrt(E) afterwards (folded into the epilogue).
    """
    kv = pl.program_id(2)

    @pl.when(kv == 0)
    def _():
        m_sc[...] = jnp.full_like(m_sc, -jnp.inf)
        l_sc[...] = jnp.zeros_like(l_sc)
        acc_sc[...] = jnp.zeros_like(acc_sc)

    q = q_ref[...]                                       # (tq, D)
    k = k_ref[...]                                       # (tkv, D)
    # energy = q @ k^T : contract on d directly (no explicit XLU transpose).
    s = lax.dot_general(q, k, (((1,), (1,)), ((), ())),
                        preferred_element_type=jnp.float32)          # (tq, tkv)

    m_prev = m_sc[...]
    m_new = jnp.maximum(m_prev, jnp.max(s, axis=-1, keepdims=True))  # (tq, 1)
    alpha = jnp.exp(m_prev - m_new)
    p = jnp.exp(s - m_new)
    l_sc[...] = alpha * l_sc[...] + jnp.sum(p, axis=-1, keepdims=True)
    acc_sc[...] = alpha * acc_sc[...] + jnp.dot(
        p.astype(v_ref.dtype), v_ref[...], preferred_element_type=jnp.float32)
    m_sc[...] = m_new

    @pl.when(kv == pl.num_programs(2) - 1)
    def _():
        # Fold the softmax denominator and the post-softmax 1/sqrt(E) into a
        # single multiply over the small (tq, D) context.
        inv_l = pl.reciprocal(l_sc[...], approx=approx_recip)
        o_ref[...] = (acc_sc[...] * (inv_l * inv_scale)).astype(o_ref.dtype)


def pallas_flash_attention(q, k, v, scale, *, tq_target=256, tkv_target=512):
    """q, k, v: (B*H, N, D).  Returns (softmax(q k^T, -1) / scale) @ v."""
    BH, N, D = q.shape
    tq = _attn_tile(N, tq_target)
    tkv = _attn_tile(N, tkv_target)
    approx = q.dtype != jnp.float32   # exact reciprocal on the f32 path

    nbytes = q.dtype.itemsize
    n_q = N // tq
    cost = pl.CostEstimate(
        flops=4 * BH * N * N * D,                 # q.k^T and p.v
        transcendentals=BH * N * N,               # exp
        bytes_accessed=nbytes * BH * N * D * (2 * n_q + 2),
    )

    kern = functools.partial(_flash_attn_kernel, inv_scale=1.0 / scale,
                             approx_recip=approx)
    return pl.pallas_call(
        kern,
        out_shape=jax.ShapeDtypeStruct((BH, N, D), q.dtype),
        grid_spec=pltpu.PrefetchScalarGridSpec(
            num_scalar_prefetch=0,
            grid=(BH, N // tq, N // tkv),
            in_specs=[
                pl.BlockSpec((None, tq, D), lambda bh, qi, ki: (bh, qi, 0)),
                pl.BlockSpec((None, tkv, D), lambda bh, qi, ki: (bh, ki, 0)),
                pl.BlockSpec((None, tkv, D), lambda bh, qi, ki: (bh, ki, 0)),
            ],
            out_specs=pl.BlockSpec((None, tq, D), lambda bh, qi, ki: (bh, qi, 0)),
            scratch_shapes=[
                pltpu.VMEM((tq, 1), jnp.float32),   # running max m
                pltpu.VMEM((tq, 1), jnp.float32),   # running sum l
                pltpu.VMEM((tq, D), jnp.float32),   # running context acc
            ],
        ),
        compiler_params=pltpu.CompilerParams(
            dimension_semantics=("parallel", "parallel", "arbitrary"),
            vmem_limit_bytes=48 * 1024 * 1024,
        ),
        cost_estimate=cost,
    )(q, k, v)


# ------------------------------ param preparation -----------------------------
def prepare_params(params, num_heads):
    """One-time (offline) re-layout of the QKV projection.

    The PyTorch rearrange treats the 3E output columns as '(h d qkv)' with the
    qkv split innermost.  Permuting Wqkv/bqkv columns to '(qkv h d)' makes
    q/k/v contiguous slabs of the projection output (removes the stride-3
    gather and enables the future zero-copy column-slab BlockSpec path).
    """
    E = params["w_qkv"].shape[0]
    D = E // num_heads
    s = jnp.arange(3)[:, None, None]
    h = jnp.arange(num_heads)[None, :, None]
    d = jnp.arange(D)[None, None, :]
    src = (h * (D * 3) + d * 3 + s).reshape(-1)   # new column -> original column
    return {
        "w_qkv": params["w_qkv"][:, src],
        "b_qkv": params["b_qkv"][src],
        "w_proj": params["w_proj"],
        "b_proj": params["b_proj"],
    }


# ------------------------------ full forward ----------------------------------
def multi_head_attention(x, params, num_heads, *, compute_dtype=jnp.bfloat16):
    """Forward pass.  `params` must come from prepare_params().

    compute_dtype: operand dtype fed to the MXU (accumulation is always f32).
    bf16 (default) runs the MXU at full rate on v5e/v6e/v7x; float32 is kept
    for tight numerical validation.
    """
    B, N, E = x.shape
    D = E // num_heads
    cd = compute_dtype

    w_qkv = params["w_qkv"].astype(cd)
    w_proj = params["w_proj"].astype(cd)
    b_qkv = params["b_qkv"].astype(jnp.float32)    # biases add to the f32 acc
    b_proj = params["b_proj"].astype(jnp.float32)

    # QKV projection (tiled Pallas GEMM) -> (B*N, 3E), columns in (qkv, h, d).
    qkv = pallas_linear(x.reshape(B * N, E).astype(cd), w_qkv, b_qkv,
                        out_dtype=cd)

    # (B, N, 3, H, D) -> (3, B, H, N, D): one XLA transpose so the flash kernel
    # sees (N, D) as its last two dims (conforms to the (8,128) block rule for
    # any head_dim, including the tiny test head_dim).
    qkv = qkv.reshape(B, N, 3, num_heads, D)
    qkv = jnp.transpose(qkv, (2, 0, 3, 1, 4))
    q = qkv[0].reshape(B * num_heads, N, D)
    k = qkv[1].reshape(B * num_heads, N, D)
    v = qkv[2].reshape(B * num_heads, N, D)

    # Flash-tiled attention (post-softmax 1/sqrt(E) scaling, as in the module).
    ctx = pallas_flash_attention(q, k, v, float(E) ** 0.5)

    # 'b h n d -> b n (h d)' then the output projection (tiled Pallas GEMM).
    ctx = ctx.reshape(B, num_heads, N, D)
    ctx = jnp.transpose(ctx, (0, 2, 1, 3)).reshape(B * N, E)
    out = pallas_linear(ctx, w_proj, b_proj, out_dtype=x.dtype)
    return out.reshape(B, N, E)


# ------------------------------ reference (JAX) --------------------------------
def reference_mha(x, params, num_heads):
    # Uses the ORIGINAL (unpermuted) parameter layout and the original gather
    # path, so it also validates prepare_params().
    B, N, E = x.shape
    D = E // num_heads
    qkv = x @ params["w_qkv"] + params["b_qkv"]
    qkv = qkv.reshape(B, N, num_heads, D, 3)
    qkv = jnp.transpose(qkv, (4, 0, 2, 1, 3))
    q, k, v = qkv[0], qkv[1], qkv[2]
    energy = jnp.einsum("bhqd,bhkd->bhqk", q, k)
    attn = jax.nn.softmax(energy, axis=-1) / (float(E) ** 0.5)
    out = jnp.einsum("bhal,bhlv->bhav", attn, v)
    out = jnp.transpose(out, (0, 2, 1, 3)).reshape(B, N, E)
    return out @ params["w_proj"] + params["b_proj"]


if __name__ == "__main__":
    B, N, E, H = 2, 8, 32, 4   # batch, seq, emb_size, num_heads

    key = jax.random.PRNGKey(0)
    k1, k2, k3, k4, k5 = jax.random.split(key, 5)
    params = {
        # weights stored pre-transposed: y = x @ w + b
        "w_qkv": jax.random.normal(k1, (E, 3 * E), jnp.float32) * 0.05,
        "b_qkv": jax.random.normal(k2, (3 * E,), jnp.float32) * 0.05,
        "w_proj": jax.random.normal(k3, (E, E), jnp.float32) * 0.05,
        "b_proj": jax.random.normal(k4, (E,), jnp.float32) * 0.05,
    }
    x = jax.random.normal(k5, (B, N, E), jnp.float32)

    fast_params = prepare_params(params, H)   # one-time offline re-layout
    ref = reference_mha(x, params, H)

    # f32 path: tight validation of the flash/GEMM kernel structure.
    mha_f32 = jax.jit(functools.partial(multi_head_attention, num_heads=H,
                                        compute_dtype=jnp.float32))
    out_f32 = jax.block_until_ready(mha_f32(x, fast_params))
    assert out_f32.shape == (B, N, E)
    assert jnp.allclose(out_f32, ref, atol=1e-4, rtol=1e-4), \
        float(jnp.max(jnp.abs(out_f32 - ref)))

    # bf16 path (default / fast): MXU-rate operands, f32 accumulation.
    mha_bf16 = jax.jit(functools.partial(multi_head_attention, num_heads=H,
                                         compute_dtype=jnp.bfloat16))
    out_bf16 = jax.block_until_ready(mha_bf16(x, fast_params))
    assert out_bf16.shape == (B, N, E)
    assert jnp.allclose(out_bf16, ref, atol=3e-2, rtol=5e-2), \
        float(jnp.max(jnp.abs(out_bf16 - ref)))

    print("KERNEL_OK")
</pallas_src>

<mosaic_0001>
module attributes {stable_mosaic.version = 11 : i64} {
  func.func @_linear_kernel(%arg0: i32, %arg1: i32, %arg2: i32, %arg3: memref<16x32xf32, #tpu.memory_space<vmem>>, %arg4: memref<32x96xf32, #tpu.memory_space<vmem>>, %arg5: memref<1x96xf32, #tpu.memory_space<vmem>>, %arg6: memref<16x96xf32, #tpu.memory_space<vmem>>, %arg7: memref<16x96xf32, #tpu.memory_space<vmem>>) attributes {dimension_semantics = [#tpu.dimension_semantics<parallel>, #tpu.dimension_semantics<parallel>, #tpu.dimension_semantics<arbitrary>], iteration_bounds = array<i64: 1, 1, 1>, scalar_prefetch = 0 : i64, scratch_operands = 1 : i64, tpu.core_type = #tpu.core_type<tc>, window_params = [{transform_indices = @transform_0, window_bounds = array<i64: 16, 32>}, {transform_indices = @transform_1, window_bounds = array<i64: 32, 96>}, {transform_indices = @transform_2, window_bounds = array<i64: 1, 96>}, {transform_indices = @transform_3, window_bounds = array<i64: 16, 96>}]} {
    %c0_i32 = arith.constant 0 : i32
    %0 = arith.cmpi eq, %arg2, %c0_i32 : i32
    %1 = arith.extui %0 : i1 to i32
    %c0_i32_0 = arith.constant 0 : i32
    %2 = arith.cmpi ne, %1, %c0_i32_0 : i32
    scf.if %2 {
      %cst_10 = arith.constant 0.000000e+00 : f32
      %12 = vector.broadcast %cst_10 : f32 to vector<16x96xf32>
      %c0_11 = arith.constant 0 : index
      %c0_12 = arith.constant 0 : index
      %13 = vector.load %arg7[%c0_11, %c0_12] : memref<16x96xf32, #tpu.memory_space<vmem>>, vector<16x96xf32>
      tpu.vector_store %arg7[%c0_11, %c0_12], %12 {strides = array<i32>} : memref<16x96xf32, #tpu.memory_space<vmem>>, vector<16x96xf32>,
    } else {
    }
    %c0 = arith.constant 0 : index
    %c0_1 = arith.constant 0 : index
    %3 = vector.load %arg7[%c0, %c0_1] : memref<16x96xf32, #tpu.memory_space<vmem>>, vector<16x96xf32>
    %c0_2 = arith.constant 0 : index
    %c0_3 = arith.constant 0 : index
    %4 = vector.load %arg3[%c0_2, %c0_3] : memref<16x32xf32, #tpu.memory_space<vmem>>, vector<16x32xf32>
    %c0_4 = arith.constant 0 : index
    %c0_5 = arith.constant 0 : index
    %5 = vector.load %arg4[%c0_4, %c0_5] : memref<32x96xf32, #tpu.memory_space<vmem>>, vector<32x96xf32>
    %cst = arith.constant dense<0.000000e+00> : vector<16x96xf32>
    %6 = tpu.matmul %4, %5, %cst {dimension_numbers = #tpu.dot_dimension_numbers<[1], [0], [0], [1], [0, 0, 1, 1], [], []>} : vector<16x32xf32>, vector<32x96xf32>, vector<16x96xf32> -> vector<16x96xf32>
    %7 = arith.addf %3, %6 : vector<16x96xf32>
    %c0_6 = arith.constant 0 : index
    %c0_7 = arith.constant 0 : index
    %8 = vector.load %arg7[%c0_6, %c0_7] : memref<16x96xf32, #tpu.memory_space<vmem>>, vector<16x96xf32>
    tpu.vector_store %arg7[%c0_6, %c0_7], %7 {strides = array<i32>} : memref<16x96xf32, #tpu.memory_space<vmem>>, vector<16x96xf32>,
    %c0_i32_8 = arith.constant 0 : i32
    %9 = arith.cmpi eq, %arg2, %c0_i32_8 : i32
    %10 = arith.extui %9 : i1 to i32
    %c0_i32_9 = arith.constant 0 : i32
    %11 = arith.cmpi ne, %10, %c0_i32_9 : i32
    scf.if %11 {
      %c0_10 = arith.constant 0 : index
      %c0_11 = arith.constant 0 : index
      %12 = vector.load %arg7[%c0_10, %c0_11] : memref<16x96xf32, #tpu.memory_space<vmem>>, vector<16x96xf32>
      %c0_12 = arith.constant 0 : index
      %c0_13 = arith.constant 0 : index
      %13 = vector.load %arg5[%c0_12, %c0_13] : memref<1x96xf32, #tpu.memory_space<vmem>>, vector<1x96xf32>
      %14 = vector.broadcast %13 : vector<1x96xf32> to vector<16x96xf32>
      %15 = arith.addf %12, %14 : vector<16x96xf32>
      %c0_14 = arith.constant 0 : index
      %c0_15 = arith.constant 0 : index
      %16 = vector.load %arg6[%c0_14, %c0_15] : memref<16x96xf32, #tpu.memory_space<vmem>>, vector<16x96xf32>
      tpu.vector_store %arg6[%c0_14, %c0_15], %15 {strides = array<i32>} : memref<16x96xf32, #tpu.memory_space<vmem>>, vector<16x96xf32>,
    } else {
    }
    return
  }
  func.func @transform_0(%arg0: i32, %arg1: i32, %arg2: i32) -> (i32, i32) {
    %c0_i32 = arith.constant 0 : i32
    return %arg0, %arg2 : i32, i32
  }
  func.func @transform_1(%arg0: i32, %arg1: i32, %arg2: i32) -> (i32, i32) {
    %c0_i32 = arith.constant 0 : i32
    return %arg2, %arg1 : i32, i32
  }
  func.func @transform_2(%arg0: i32, %arg1: i32, %arg2: i32) -> (i32, i32) {
    %c0_i32 = arith.constant 0 : i32
    %c0_i32_0 = arith.constant 0 : i32
    return %c0_i32, %arg1 : i32, i32
  }
  func.func @transform_3(%arg0: i32, %arg1: i32, %arg2: i32) -> (i32, i32) {
    %c0_i32 = arith.constant 0 : i32
    return %arg0, %arg1 : i32, i32
  }
}

module attributes {stable_mosaic.version = 11 : i64} {
  func.func @_flash_attn_kernel(%arg0: i32, %arg1: i32, %arg2: i32, %arg3: memref<1x8x8xf32, #tpu.memory_space<vmem>>, %arg4: memref<1x8x8xf32, #tpu.memory_space<vmem>>, %arg5: memref<1x8x8xf32, #tpu.memory_space<vmem>>, %arg6: memref<1x8x8xf32, #tpu.memory_space<vmem>>, %arg7: memref<8x1xf32, #tpu.memory_space<vmem>>, %arg8: memref<8x1xf32, #tpu.memory_space<vmem>>, %arg9: memref<8x8xf32, #tpu.memory_space<vmem>>) attributes {dimension_semantics = [#tpu.dimension_semantics<parallel>, #tpu.dimension_semantics<parallel>, #tpu.dimension_semantics<arbitrary>], iteration_bounds = array<i64: 8, 1, 1>, scalar_prefetch = 0 : i64, scratch_operands = 3 : i64, tpu.core_type = #tpu.core_type<tc>, window_params = [{transform_indices = @transform_0, window_bounds = array<i64: 1, 8, 8>}, {transform_indices = @transform_1, window_bounds = array<i64: 1, 8, 8>}, {transform_indices = @transform_2, window_bounds = array<i64: 1, 8, 8>}, {transform_indices = @transform_3, window_bounds = array<i64: 1, 8, 8>}]} {
    %c0_i32 = arith.constant 0 : i32
    %0 = arith.cmpi eq, %arg2, %c0_i32 : i32
    %1 = arith.extui %0 : i1 to i32
    %c0_i32_0 = arith.constant 0 : i32
    %2 = arith.cmpi ne, %1, %c0_i32_0 : i32
    scf.if %2 {
      %cst_26 = arith.constant 0xFF800000 : f32
      %35 = vector.broadcast %cst_26 : f32 to vector<8x1xf32>
      %c0_27 = arith.constant 0 : index
      %c0_28 = arith.constant 0 : index
      %36 = vector.load %arg7[%c0_27, %c0_28] : memref<8x1xf32, #tpu.memory_space<vmem>>, vector<8x1xf32>
      tpu.vector_store %arg7[%c0_27, %c0_28], %35 {strides = array<i32>} : memref<8x1xf32, #tpu.memory_space<vmem>>, vector<8x1xf32>,
      %cst_29 = arith.constant 0.000000e+00 : f32
      %37 = vector.broadcast %cst_29 : f32 to vector<8x1xf32>
      %c0_30 = arith.constant 0 : index
      %c0_31 = arith.constant 0 : index
      %38 = vector.load %arg8[%c0_30, %c0_31] : memref<8x1xf32, #tpu.memory_space<vmem>>, vector<8x1xf32>
      tpu.vector_store %arg8[%c0_30, %c0_31], %37 {strides = array<i32>} : memref<8x1xf32, #tpu.memory_space<vmem>>, vector<8x1xf32>,
      %cst_32 = arith.constant 0.000000e+00 : f32
      %39 = vector.broadcast %cst_32 : f32 to vector<8x8xf32>
      %c0_33 = arith.constant 0 : index
      %c0_34 = arith.constant 0 : index
      %40 = vector.load %arg9[%c0_33, %c0_34] : memref<8x8xf32, #tpu.memory_space<vmem>>, vector<8x8xf32>
      tpu.vector_store %arg9[%c0_33, %c0_34], %39 {strides = array<i32>} : memref<8x8xf32, #tpu.memory_space<vmem>>, vector<8x8xf32>,
    } else {
    }
    %c0 = arith.constant 0 : index
    %c0_1 = arith.constant 0 : index
    %c0_2 = arith.constant 0 : index
    %3 = vector.load %arg3[%c0, %c0_1, %c0_2] : memref<1x8x8xf32, #tpu.memory_space<vmem>>, vector<1x8x8xf32>
    %4 = vector.shape_cast %3 : vector<1x8x8xf32> to vector<8x8xf32>
    %c0_3 = arith.constant 0 : index
    %c0_4 = arith.constant 0 : index
    %c0_5 = arith.constant 0 : index
    %5 = vector.load %arg4[%c0_3, %c0_4, %c0_5] : memref<1x8x8xf32, #tpu.memory_space<vmem>>, vector<1x8x8xf32>
    %6 = vector.shape_cast %5 : vector<1x8x8xf32> to vector<8x8xf32>
    %cst = arith.constant dense<0.000000e+00> : vector<8x8xf32>
    %7 = tpu.matmul %4, %6, %cst {dimension_numbers = #tpu.dot_dimension_numbers<[1], [1], [0], [0], [0, 0, 1, 0], [], []>} : vector<8x8xf32>, vector<8x8xf32>, vector<8x8xf32> -> vector<8x8xf32>
    %c0_6 = arith.constant 0 : index
    %c0_7 = arith.constant 0 : index
    %8 = vector.load %arg7[%c0_6, %c0_7] : memref<8x1xf32, #tpu.memory_space<vmem>>, vector<8x1xf32>
    %cst_8 = arith.constant dense<0xFF800000> : vector<8xf32>
    %9 = vector.multi_reduction <maximumf>, %7, %cst_8 [1] : vector<8x8xf32> to vector<8xf32>
    %10 = vector.shape_cast %9 : vector<8xf32> to vector<8x1xf32>
    %11 = arith.maximumf %8, %10 : vector<8x1xf32>
    %12 = arith.subf %8, %11 : vector<8x1xf32>
    %13 = math.exp %12 : vector<8x1xf32>
    %14 = vector.broadcast %11 : vector<8x1xf32> to vector<8x8xf32>
    %15 = arith.subf %7, %14 : vector<8x8xf32>
    %16 = math.exp %15 : vector<8x8xf32>
    %c0_9 = arith.constant 0 : index
    %c0_10 = arith.constant 0 : index
    %17 = vector.load %arg8[%c0_9, %c0_10] : memref<8x1xf32, #tpu.memory_space<vmem>>, vector<8x1xf32>
    %18 = arith.mulf %13, %17 : vector<8x1xf32>
    %cst_11 = arith.constant dense<0.000000e+00> : vector<8xf32>
    %19 = vector.multi_reduction <add>, %16, %cst_11 [1] : vector<8x8xf32> to vector<8xf32>
    %20 = vector.shape_cast %19 : vector<8xf32> to vector<8x1xf32>
    %21 = arith.addf %18, %20 : vector<8x1xf32>
    %c0_12 = arith.constant 0 : index
    %c0_13 = arith.constant 0 : index
    %22 = vector.load %arg8[%c0_12, %c0_13] : memref<8x1xf32, #tpu.memory_space<vmem>>, vector<8x1xf32>
    tpu.vector_store %arg8[%c0_12, %c0_13], %21 {strides = array<i32>} : memref<8x1xf32, #tpu.memory_space<vmem>>, vector<8x1xf32>,
    %c0_14 = arith.constant 0 : index
    %c0_15 = arith.constant 0 : index
    %23 = vector.load %arg9[%c0_14, %c0_15] : memref<8x8xf32, #tpu.memory_space<vmem>>, vector<8x8xf32>
    %24 = vector.broadcast %13 : vector<8x1xf32> to vector<8x8xf32>
    %25 = arith.mulf %24, %23 : vector<8x8xf32>
    %c0_16 = arith.constant 0 : index
    %c0_17 = arith.constant 0 : index
    %c0_18 = arith.constant 0 : index
    %26 = vector.load %arg5[%c0_16, %c0_17, %c0_18] : memref<1x8x8xf32, #tpu.memory_space<vmem>>, vector<1x8x8xf32>
    %27 = vector.shape_cast %26 : vector<1x8x8xf32> to vector<8x8xf32>
    %cst_19 = arith.constant dense<0.000000e+00> : vector<8x8xf32>
    %28 = tpu.matmul %16, %27, %cst_19 {dimension_numbers = #tpu.dot_dimension_numbers<[1], [0], [0], [1], [0, 0, 1, 1], [], []>} : vector<8x8xf32>, vector<8x8xf32>, vector<8x8xf32> -> vector<8x8xf32>
    %29 = arith.addf %25, %28 : vector<8x8xf32>
    %c0_20 = arith.constant 0 : index
    %c0_21 = arith.constant 0 : index
    %30 = vector.load %arg9[%c0_20, %c0_21] : memref<8x8xf32, #tpu.memory_space<vmem>>, vector<8x8xf32>
    tpu.vector_store %arg9[%c0_20, %c0_21], %29 {strides = array<i32>} : memref<8x8xf32, #tpu.memory_space<vmem>>, vector<8x8xf32>,
    %c0_22 = arith.constant 0 : index
    %c0_23 = arith.constant 0 : index
    %31 = vector.load %arg7[%c0_22, %c0_23] : memref<8x1xf32, #tpu.memory_space<vmem>>, vector<8x1xf32>
    tpu.vector_store %arg7[%c0_22, %c0_23], %11 {strides = array<i32>} : memref<8x1xf32, #tpu.memory_space<vmem>>, vector<8x1xf32>,
    %c0_i32_24 = arith.constant 0 : i32
    %32 = arith.cmpi eq, %arg2, %c0_i32_24 : i32
    %33 = arith.extui %32 : i1 to i32
    %c0_i32_25 = arith.constant 0 : i32
    %34 = arith.cmpi ne, %33, %c0_i32_25 : i32
    scf.if %34 {
      %c0_26 = arith.constant 0 : index
      %c0_27 = arith.constant 0 : index
      %35 = vector.load %arg8[%c0_26, %c0_27] : memref<8x1xf32, #tpu.memory_space<vmem>>, vector<8x1xf32>
      %36 = tpu.reciprocal %35 : vector<8x1xf32> -> vector<8x1xf32>
      %c0_28 = arith.constant 0 : index
      %c0_29 = arith.constant 0 : index
      %37 = vector.load %arg9[%c0_28, %c0_29] : memref<8x8xf32, #tpu.memory_space<vmem>>, vector<8x8xf32>
      %cst_30 = arith.constant 0.176776692 : f32
      %38 = vector.broadcast %cst_30 : f32 to vector<8x1xf32>
      %39 = arith.mulf %36, %38 : vector<8x1xf32>
      %40 = vector.broadcast %39 : vector<8x1xf32> to vector<8x8xf32>
      %41 = arith.mulf %37, %40 : vector<8x8xf32>
      %c0_31 = arith.constant 0 : index
      %c0_32 = arith.constant 0 : index
      %c0_33 = arith.constant 0 : index
      %42 = vector.load %arg6[%c0_31, %c0_32, %c0_33] : memref<1x8x8xf32, #tpu.memory_space<vmem>>, vector<1x8x8xf32>
      %43 = vector.shape_cast %42 : vector<1x8x8xf32> to vector<8x8xf32>
      %44 = vector.shape_cast %41 : vector<8x8xf32> to vector<1x8x8xf32>
      tpu.vector_store %arg6[%c0_31, %c0_32, %c0_33], %44 {strides = array<i32>} : memref<1x8x8xf32, #tpu.memory_space<vmem>>, vector<1x8x8xf32>,
    } else {
    }
    return
  }
  func.func @transform_0(%arg0: i32, %arg1: i32, %arg2: i32) -> (i32, i32, i32) {
    %c0_i32 = arith.constant 0 : i32
    %c0_i32_0 = arith.constant 0 : i32
    return %arg0, %arg1, %c0_i32 : i32, i32, i32
  }
  func.func @transform_1(%arg0: i32, %arg1: i32, %arg2: i32) -> (i32, i32, i32) {
    %c0_i32 = arith.constant 0 : i32
    %c0_i32_0 = arith.constant 0 : i32
    return %arg0, %arg2, %c0_i32 : i32, i32, i32
  }
  func.func @transform_2(%arg0: i32, %arg1: i32, %arg2: i32) -> (i32, i32, i32) {
    %c0_i32 = arith.constant 0 : i32
    %c0_i32_0 = arith.constant 0 : i32
    return %arg0, %arg2, %c0_i32 : i32, i32, i32
  }
  func.func @transform_3(%arg0: i32, %arg1: i32, %arg2: i32) -> (i32, i32, i32) {
    %c0_i32 = arith.constant 0 : i32
    %c0_i32_0 = arith.constant 0 : i32
    return %arg0, %arg1, %c0_i32 : i32, i32, i32
  }
}

module attributes {stable_mosaic.version = 11 : i64} {
  func.func @_linear_kernel(%arg0: i32, %arg1: i32, %arg2: i32, %arg3: memref<16x32xf32, #tpu.memory_space<vmem>>, %arg4: memref<32x32xf32, #tpu.memory_space<vmem>>, %arg5: memref<1x32xf32, #tpu.memory_space<vmem>>, %arg6: memref<16x32xf32, #tpu.memory_space<vmem>>, %arg7: memref<16x32xf32, #tpu.memory_space<vmem>>) attributes {dimension_semantics = [#tpu.dimension_semantics<parallel>, #tpu.dimension_semantics<parallel>, #tpu.dimension_semantics<arbitrary>], iteration_bounds = array<i64: 1, 1, 1>, scalar_prefetch = 0 : i64, scratch_operands = 1 : i64, tpu.core_type = #tpu.core_type<tc>, window_params = [{transform_indices = @transform_0, window_bounds = array<i64: 16, 32>}, {transform_indices = @transform_1, window_bounds = array<i64: 32, 32>}, {transform_indices = @transform_2, window_bounds = array<i64: 1, 32>}, {transform_indices = @transform_3, window_bounds = array<i64: 16, 32>}]} {
    %c0_i32 = arith.constant 0 : i32
    %0 = arith.cmpi eq, %arg2, %c0_i32 : i32
    %1 = arith.extui %0 : i1 to i32
    %c0_i32_0 = arith.constant 0 : i32
    %2 = arith.cmpi ne, %1, %c0_i32_0 : i32
    scf.if %2 {
      %cst_10 = arith.constant 0.000000e+00 : f32
      %12 = vector.broadcast %cst_10 : f32 to vector<16x32xf32>
      %c0_11 = arith.constant 0 : index
      %c0_12 = arith.constant 0 : index
      %13 = vector.load %arg7[%c0_11, %c0_12] : memref<16x32xf32, #tpu.memory_space<vmem>>, vector<16x32xf32>
      tpu.vector_store %arg7[%c0_11, %c0_12], %12 {strides = array<i32>} : memref<16x32xf32, #tpu.memory_space<vmem>>, vector<16x32xf32>,
    } else {
    }
    %c0 = arith.constant 0 : index
    %c0_1 = arith.constant 0 : index
    %3 = vector.load %arg7[%c0, %c0_1] : memref<16x32xf32, #tpu.memory_space<vmem>>, vector<16x32xf32>
    %c0_2 = arith.constant 0 : index
    %c0_3 = arith.constant 0 : index
    %4 = vector.load %arg3[%c0_2, %c0_3] : memref<16x32xf32, #tpu.memory_space<vmem>>, vector<16x32xf32>
    %c0_4 = arith.constant 0 : index
    %c0_5 = arith.constant 0 : index
    %5 = vector.load %arg4[%c0_4, %c0_5] : memref<32x32xf32, #tpu.memory_space<vmem>>, vector<32x32xf32>
    %cst = arith.constant dense<0.000000e+00> : vector<16x32xf32>
    %6 = tpu.matmul %4, %5, %cst {dimension_numbers = #tpu.dot_dimension_numbers<[1], [0], [0], [1], [0, 0, 1, 1], [], []>} : vector<16x32xf32>, vector<32x32xf32>, vector<16x32xf32> -> vector<16x32xf32>
    %7 = arith.addf %3, %6 : vector<16x32xf32>
    %c0_6 = arith.constant 0 : index
    %c0_7 = arith.constant 0 : index
    %8 = vector.load %arg7[%c0_6, %c0_7] : memref<16x32xf32, #tpu.memory_space<vmem>>, vector<16x32xf32>
    tpu.vector_store %arg7[%c0_6, %c0_7], %7 {strides = array<i32>} : memref<16x32xf32, #tpu.memory_space<vmem>>, vector<16x32xf32>,
    %c0_i32_8 = arith.constant 0 : i32
    %9 = arith.cmpi eq, %arg2, %c0_i32_8 : i32
    %10 = arith.extui %9 : i1 to i32
    %c0_i32_9 = arith.constant 0 : i32
    %11 = arith.cmpi ne, %10, %c0_i32_9 : i32
    scf.if %11 {
      %c0_10 = arith.constant 0 : index
      %c0_11 = arith.constant 0 : index
      %12 = vector.load %arg7[%c0_10, %c0_11] : memref<16x32xf32, #tpu.memory_space<vmem>>, vector<16x32xf32>
      %c0_12 = arith.constant 0 : index
      %c0_13 = arith.constant 0 : index
      %13 = vector.load %arg5[%c0_12, %c0_13] : memref<1x32xf32, #tpu.memory_space<vmem>>, vector<1x32xf32>
      %14 = vector.broadcast %13 : vector<1x32xf32> to vector<16x32xf32>
      %15 = arith.addf %12, %14 : vector<16x32xf32>
      %c0_14 = arith.constant 0 : index
      %c0_15 = arith.constant 0 : index
      %16 = vector.load %arg6[%c0_14, %c0_15] : memref<16x32xf32, #tpu.memory_space<vmem>>, vector<16x32xf32>
      tpu.vector_store %arg6[%c0_14, %c0_15], %15 {strides = array<i32>} : memref<16x32xf32, #tpu.memory_space<vmem>>, vector<16x32xf32>,
    } else {
    }
    return
  }
  func.func @transform_0(%arg0: i32, %arg1: i32, %arg2: i32) -> (i32, i32) {
    %c0_i32 = arith.constant 0 : i32
    return %arg0, %arg2 : i32, i32
  }
  func.func @transform_1(%arg0: i32, %arg1: i32, %arg2: i32) -> (i32, i32) {
    %c0_i32 = arith.constant 0 : i32
    return %arg2, %arg1 : i32, i32
  }
  func.func @transform_2(%arg0: i32, %arg1: i32, %arg2: i32) -> (i32, i32) {
    %c0_i32 = arith.constant 0 : i32
    %c0_i32_0 = arith.constant 0 : i32
    return %c0_i32, %arg1 : i32, i32
  }
  func.func @transform_3(%arg0: i32, %arg1: i32, %arg2: i32) -> (i32, i32) {
    %c0_i32 = arith.constant 0 : i32
    return %arg0, %arg1 : i32, i32
  }
}

</mosaic_0001>

<bundles_post_ra>
// kernel: multi_head_attention.4
= control target key start
LH: loop header
LB: loop body
LE: loop exit
PB: predicated region body
PF: predicated region fallthrough
CT: control target
= control target key end

     0   :  { %s689_s12 = smov 0   ;;  %s691_s13 = smov 0   ;;  %s746_s0 = inlined_call_operand.vmem [shape: f32[8,8,8], index: 0, kind: input, shape index: {}]   ;;  %s747_s1 = inlined_call_operand.vmem [shape: f32[8,8,8], index: 1, kind: input, shape index: {}]   ;;  %s748_s2 = inlined_call_operand.vmem [shape: f32[8,8,8], index: 2, kind: input, shape index: {}]   ;;  %s749_s3 = inlined_call_operand.vmem [shape: f32[8,8,8], index: 3, kind: output, shape index: {}]  }
   0x1   :  { %s693_s14 = smov 0  }
   0x2 LB: > { %s32_s15 = sadd.s32 1, %s659_s13  ;;  %p581_p0 = scmp.ge.s32.totalorder %s663_s14, 1  ;;  %s663_s14 = sphi %s693_s14, %s13_s14   ;;  %s659_s13 = sphi %s691_s13, %s751_s13   ;;  %s655_s12 = sphi %s689_s12, %s750_s12  }
   0x3   : > { %p34_p1 = scmp.ge.s32.totalorder %s32_s15, 8  ;;  %p190_p2 = scmp.lt.s32.totalorder %s663_s14, 9 }
   0x5   : > { %s753_s15 = smov (%p34_p1, %s32_s15), 0  ;;  %p191_p3 = pnand %p581_p0, %p190_p2 }
   0x6   : > { %p232_p4 = scmp.lt.s32.totalorder (!%p191_p3), %s655_s12, 7 }
   0x7   : > { %194 = sbr.rel (%p191_p3) target bundleno = 787 (0x313), region = 32 }
   0xc   : > { %vm267_vm0 = vcmask 64512   ;;  %v665_v0 = vmov 0.0   ;;  %vm666_vm1 = vmmov 0   ;;  %s755_s12 = smov (!%p232_p4, %s655_s12), 7  ;;  %vm264_vm2 = vcmask 7168  }
   0xd   : > { %595 = vmatprep.subr.mxu0 %v665_v0  ;;  %268 = vst.msk [vmem:[#allocation4] sm:$0xff] %vm267_vm0, %v665_v0  ;;  %597 = vmatprep.mubr.msk.f32.mxu0 %vm666_vm1, %v665_v0  ;;  %s708_s16 = sshll.u32 %s755_s12, 3  ;;  %v667_v3 = vmov -inf   ;;  %v668_v7 = vmov 0  }
   0xe   : > { %600 = vmatprep.subr.mxu1 %v665_v0  ;;  %602 = vmatprep.mubr.msk.f32.mxu1 %vm666_vm1, %v665_v0  ;;  %s245_s19 = scalar_lea.vmem %s747_s1, %s708_s16  ;;  %s238_s22 = scalar_lea.vmem %s746_s0, %s708_s16  ;;  %265 = vst.msk [vmem:[#allocation2] sm:$0xff] %vm264_vm2, %v667_v3  ;;  %266 = vst.msk [vmem:[#allocation3] sm:$0xff] %vm264_vm2, %v665_v0 }
   0xf   : > { %v270_v1 = vld [vmem:[%s245_s19] sm:$0xff]  ;;  %633 = vset.pattern.permute.xlu0 %v668_v7  ;;  %634 = vset.pattern.permute.xlu1 %v668_v7  ;;  %s252_s25 = scalar_lea.vmem %s748_s2, %s708_s16  ;;  %s259_s28 = scalar_lea.vmem %s749_s3, %s708_s16 }
  0x10   : > { %596 = vmatpush3.xpose.msk.msra.mxu0 %vm267_vm0, %v270_v1  ;;  %v269_v2 = vld [vmem:[%s238_s22] sm:$0xff] }
  0x11   : > { %v379_v12 = vld [vmem:[%s252_s25] sm:$0xff] }
  0x12   : > { %601 = vmatpush3.msra.mxu1 %v379_v12 }
  0x13   : > { %598 = vmatmul.mubr.msk.f32.vlgmr.msra.gmra.mxu0 %vm267_vm0, %v269_v2 }
  0x14   : > { %v372_v27 = vld [vmem:[#allocation4] sm:$0xff] }
  0x15   : > { %v348_v8 = vld [vmem:[#allocation2] sm:$0xff]  ;;  %v364_v20 = vld [vmem:[#allocation3] sm:$0xff] }
  0xd3   : > { %v344_v4 = vpop.f32.mrf.mxu0 }
  0xd4   : > { %v349_v5 = vsel %vm267_vm0, %v344_v4, -inf }
  0xd5   : > { %350 = vmax.xlane.f32.xlu0 %v349_v5  ;;  %v599_v6 = vpop.f32.mrf.mxu0 }
 0x15e   : > { %v351_v9 = vpop.xlane.xlu0 %350 }
 0x15f   : > { %v352_v10 = vmax.f32 %v348_v8, %v351_v9 }
 0x161   : > { %v353_v11 = vsub.f32 %v348_v8, %v352_v10  ;;  %455 = vst.msk [vmem:[#allocation2] sm:$0xff] %vm264_vm2, %v352_v10  ;;  %358 = vperm.xlu0 %633, %v352_v10  }
 0x163   : > { %v354_v17 = vmul.f32 1.442695, %v353_v11 }
 0x1dc   : > { %v359_v13 = vpop.permute.xlu0 %358 }
 0x1dd   : > { %v361_v14 = vsub.f32 %v344_v4, %v359_v13 }
 0x1df   : > { %v362_v15 = vmul.f32 1.442695, %v361_v14 }
 0x1e1   : > { %635 = vpow2.f32 %v362_v15 }
 0x1e2   : > { %637 = vpow2.f32 %v354_v17 }
 0x1ee   : > { %v636_v16 = vpop.eup %635 }
 0x1ef   : > { %603 = vmatmul.mubr.msk.f32.vlgmr.msra.gmra.mxu1 %vm267_vm0, %v636_v16  ;;  %v366_v18 = vsel %vm267_vm0, %v636_v16, 0.0  ;;  %v638_v19 = vpop.eup %637 }
 0x1f0   : > { %367 = vadd.xlane.f32.xlu1 %v366_v18  ;;  %v365_v21 = vmul.f32 %v638_v19, %v364_v20 }
 0x201   : > { %375 = vperm.xlu1 %634, %v638_v19  }
 0x279   : > { %v368_v22 = vpop.xlane.xlu1 %367 }
 0x27a   : > { %v369_v23 = vadd.f32 %v368_v22, %v365_v21 }
 0x27c   : > { %371 = vst.msk [vmem:[#allocation3] sm:$0xff] %vm264_vm2, %v369_v23 }
 0x27d   : > { %v376_v28 = vpop.permute.xlu1 %375 }
 0x27e   : > { %v378_v29 = vmul.f32 %v376_v28, %v372_v27 }
 0x283   : > { %v459_v24 = vld [vmem:[#allocation3] sm:$0xff] }
 0x284   : > { %639 = vrcp.f32 %v459_v24 }
 0x291   : > { %v640_v25 = vpop.eup %639 }
 0x292   : > { %v462_v26 = vmul.f32 0.17677669, %v640_v25 }
 0x294   : > { %465 = vperm.xlu1 %634, %v462_v26  }
 0x2af   : > { %v449_v30 = vpop.f32.mrf.mxu1 }
 0x2b0   : > { %v453_v31 = vadd.f32 %v449_v30, %v378_v29 }
 0x2b1   : > { %v604_v32 = vpop.f32.mrf.mxu1 }
 0x2b2   : > { %454 = vst.msk [vmem:[#allocation4] sm:$0xff] %vm267_vm0, %v453_v31 }
 0x2b9   : > { %v461_v33 = vld [vmem:[#allocation4] sm:$0xff] }
 0x30f   : > { %v466_v34 = vpop.permute.xlu1 %465 }
 0x310   : > { %v468_v35 = vmul.f32 %v466_v34, %v461_v33 }
 0x312   : > { %469 = vst.msk [vmem:[%s259_s28] sm:$0xff] %vm267_vm0, %v468_v35 }
 0x313 PF: > { %s13_s14 = sadd.s32 1, %s663_s14   ;;  %s750_s12 = smov %s659_s13 }
 0x314   : > { %p10_p5 = scmp.ge.s32.totalorder %s13_s14, 10   ;;  %s751_s13 = smov %s753_s15 }
 0x316   :  { %12 = sbr.rel (!%p10_p5) target bundleno = 2 (0x2), region = 76 }

// kernel: multi_head_attention.3
= control target key start
LH: loop header
LB: loop body
LE: loop exit
PB: predicated region body
PF: predicated region fallthrough
CT: control target
= control target key end

     0   :  { %8 = vsyncpa [#allocation4], 0  ;;  %s283_s0 = inlined_call_operand.hbm [shape: f32[16,32], index: 0, kind: input, shape index: {}]   ;;  %s284_s1 = inlined_call_operand.hbm [shape: f32[32,96], index: 1, kind: input, shape index: {}]   ;;  %s285_s2 = inlined_call_operand.vmem [shape: f32[1,96], index: 2, kind: input, shape index: {}]   ;;  %s286_s3 = inlined_call_operand.vmem [shape: f32[16,96], index: 3, kind: output, shape index: {}]  }
   0x1   :  { %9 = vsyncpa [#allocation6], 0  ;;  %s235_s12 = smov [#allocation3]  }
   0x2   :  { %s15_s13 = sshll.u32 %s235_s12, 4  ;;  %s16_s13 = int_to_ptr.vmem [resolvable:$true] %s15_s13 }
   0x3   :  { %s199_s14 = scalar_lea.vmem %s16_s13, 256  ;;  %p204_p1 = scmp.lt.s32.totalorder %s16_s13, %s16_s13 }
   0x4   :  { %p200_p0 = scmp.ne.s32.totalorder %s16_s13, %s199_s14  ;;  %p205_p2 = scmp.lt.s32.totalorder %s199_s14, %s199_s14 }
   0x6   :  { %p206_p3 = por %p205_p2, %p204_p1 }
   0x8   :  { %p207_p4 = pnand %p206_p3, %p200_p0 }
   0xa   :  { %210 = shalt.err (!%p207_p4)
}
   0xb   :  { %s236_s15 = smov 128   ;;  %s237_s16 = smov 8  }
   0xc   :  { %21 = dma.hbm_to_vmem [thread:$0]  %s283_s0, 256, %s16_s13, [#allocation4], %s236_s15, %s236_s15, %s237_s16  }
   0xd   :  { %s238_s19 = smov [#allocation5]  }
   0xe   :  { %s27_s20 = sshll.u32 %s238_s19, 4  ;;  %s28_s20 = int_to_ptr.vmem [resolvable:$true] %s27_s20 }
   0xf   :  { %s219_s21 = scalar_lea.vmem %s28_s20, 512  ;;  %p224_p6 = scmp.lt.s32.totalorder %s28_s20, %s28_s20 }
  0x10   :  { %p220_p5 = scmp.ne.s32.totalorder %s28_s20, %s219_s21  ;;  %p225_p7 = scmp.lt.s32.totalorder %s219_s21, %s219_s21 }
  0x12   :  { %p226_p8 = por %p225_p7, %p224_p6 }
  0x14   :  { %p227_p9 = pnand %p226_p8, %p220_p5 }
  0x16   :  { %230 = shalt.err (!%p227_p9)
}
  0x17   :  { %33 = dma.hbm_to_vmem [thread:$0]  %s284_s1, 512, %s28_s20, [#allocation6], %s236_s15, %s236_s15, %s237_s16  }
  0x18   :  { %231 = dma.done.wait [#allocation4], 256  }
  0x19   :  { %232 = vsyncadd [#allocation4], 4294967040 }
  0x1a   :  { %233 = dma.done.wait [#allocation6], 512  }
  0x1b   :  { %234 = vsyncadd [#allocation6], 4294966784  ;;  %vm46_vm0 = vcmask 785408   ;;  %v239_v0 = vmov 0.0   ;;  %vm57_vm1 = vcmask 261120   ;;  %v56_v1 = vld [vmem:[#allocation5 + $0x18] sm:$0xff] }
  0x1c   :  { %48 = vst.msk [vmem:[#allocation2 + $0x8] sm:$0xff] %vm46_vm0, %v239_v0  ;;  %47 = vst.msk [vmem:[#allocation2] sm:$0xff] %vm46_vm0, %v239_v0  ;;  %v55_v2 = vld [vmem:[#allocation5 + $0x10] sm:$0xff]  ;;  %175 = vmatprep.subr.mxu0 %v56_v1  ;;  %v54_v4 = vld [vmem:[#allocation5 + $0x8] sm:$0xff] }
  0x1d   :  { %v51_v3 = vld [vmem:[#allocation3] sm:$0xff]  ;;  %176 = vmatpush3.msra.mxu0 %v56_v1  ;;  %v53_v5 = vld [vmem:[#allocation5] sm:$0xff]  ;;  %v52_v6 = vld [vmem:[#allocation3 + $0x8] sm:$0xff] }
  0x1e   :  { %183 = vmatprep.mubr.msk.f32.mxu0 %vm57_vm1, %v51_v3  ;;  %177 = vmatprep.subr.mxu0 %v55_v2  ;;  %v168_v13 = vld [vmem:[%s285_s2] ss:$0 sm:$0xff] }
  0x1f   :  { %178 = vmatpush3.msra.mxu0 %v55_v2 }
  0x20   :  { %179 = vmatprep.subr.mxu0 %v54_v4 }
  0x21   :  { %180 = vmatpush3.msra.mxu0 %v54_v4 }
  0x22   :  { %181 = vmatprep.subr.mxu0 %v53_v5 }
  0x23   :  { %182 = vmatpush3.msra.mxu0 %v53_v5  ;;  %v50_v7 = vld [vmem:[#allocation2 + $0x8] sm:$0xff]  ;;  %v49_v9 = vld [vmem:[#allocation2] sm:$0xff] }
  0x24   :  { %184 = vmatmul.mubr.msk.f32.vlgmr.msra.gmra.mxu0 %vm57_vm1, %v52_v6 }
  0xe4   :  { %v185_v8 = vpop.f32.mrf.mxu0 }
  0xe5   :  { %v140_v10 = vadd.f32 %v185_v8, %v50_v7 }
  0xe6   :  { %v130_v11 = vpop.f32.mrf.mxu0 }
  0xe7   :  { %143 = vst.msk [vmem:[#allocation2 + $0x8] sm:$0xff] %vm46_vm0, %v140_v10  ;;  %v139_v12 = vadd.f32 %v130_v11, %v49_v9 }
  0xe9   :  { %142 = vst.msk [vmem:[#allocation2] sm:$0xff] %vm46_vm0, %v139_v12 }
  0xee   :  { %v148_v14 = vld [vmem:[#allocation2 + $0x8] sm:$0xff] }
  0xef   :  { %v157_v15 = vadd.f32 %v168_v13, %v148_v14 }
  0xf0   :  { %v147_v16 = vld [vmem:[#allocation2] sm:$0xff] }
  0xf1   :  { %159 = vst.msk [vmem:[%s286_s3 + $0x8] sm:$0xff] %vm46_vm0, %v157_v15  ;;  %v156_v17 = vadd.f32 %v168_v13, %v147_v16 }
  0xf3   :  { %158 = vst.msk [vmem:[%s286_s3] sm:$0xff] %vm46_vm0, %v156_v17 }
  0xf4   :  { %164 = vsyncpa [#allocation4], 1 }
  0xf5   :  { %165 = vsyncpa [#allocation6], 1 }

// kernel: multi_head_attention.5
= control target key start
LH: loop header
LB: loop body
LE: loop exit
PB: predicated region body
PF: predicated region fallthrough
CT: control target
= control target key end

     0   :  { %vm19_vm0 = vcmask 261120   ;;  %v194_v3 = vmov 0.0   ;;  %s250_s0 = inlined_call_operand.vmem [shape: f32[16,32], index: 0, kind: input, shape index: {}]   ;;  %s251_s1 = inlined_call_operand.vmem [shape: f32[32,32], index: 1, kind: input, shape index: {}]   ;;  %s252_s2 = inlined_call_operand.vmem [shape: f32[1,32], index: 2, kind: input, shape index: {}]   ;;  %s253_s3 = inlined_call_operand.hbm [shape: f32[16,32], index: 3, kind: output, shape index: {}]  }
   0x1   :  { %v29_v0 = vld [vmem:[%s251_s1 + $0x18] sm:$0xff]  ;;  %v28_v1 = vld [vmem:[%s251_s1 + $0x10] sm:$0xff]  ;;  %v24_v2 = vld [vmem:[%s250_s0] sm:$0xff]  ;;  %21 = vst.msk [vmem:[#allocation2 + $0x8] sm:$0xff] %vm19_vm0, %v194_v3 }
   0x2   :  { %157 = vmatprep.subr.mxu0 %v29_v0  ;;  %20 = vst.msk [vmem:[#allocation2] sm:$0xff] %vm19_vm0, %v194_v3  ;;  %v27_v4 = vld [vmem:[%s251_s1 + $0x8] sm:$0xff]  ;;  %165 = vmatprep.mubr.msk.f32.mxu0 %vm19_vm0, %v24_v2 }
   0x3   :  { %158 = vmatpush3.msra.mxu0 %v29_v0 }
   0x4   :  { %8 = vsyncpa [#allocation4], 0  ;;  %159 = vmatprep.subr.mxu0 %v28_v1  ;;  %v26_v5 = vld [vmem:[%s251_s1] sm:$0xff]  ;;  %v25_v6 = vld [vmem:[%s250_s0 + $0x8] sm:$0xff]  ;;  %s195_s25 = smov [#allocation3]  }
   0x5   :  { %160 = vmatpush3.msra.mxu0 %v28_v1  ;;  %v150_v13 = vld [vmem:[%s252_s2] ss:$0 sm:$0xff]  ;;  %s137_s0 = sshll.u32 %s195_s25, 4  ;;  %s138_s0 = int_to_ptr.vmem [resolvable:$true] %s137_s0 }
   0x6   :  { %161 = vmatprep.subr.mxu0 %v27_v4  ;;  %s172_s26 = scalar_lea.vmem %s138_s0, 256  ;;  %p177_p1 = scmp.lt.s32.totalorder %s138_s0, %s138_s0 }
   0x7   :  { %162 = vmatpush3.msra.mxu0 %v27_v4  ;;  %p173_p0 = scmp.ne.s32.totalorder %s138_s0, %s172_s26  ;;  %p178_p2 = scmp.lt.s32.totalorder %s172_s26, %s172_s26 }
   0x8   :  { %163 = vmatprep.subr.mxu0 %v26_v5  ;;  %v23_v7 = vld [vmem:[#allocation2 + $0x8] sm:$0xff] }
   0x9   :  { %164 = vmatpush3.msra.mxu0 %v26_v5  ;;  %v22_v9 = vld [vmem:[#allocation2] sm:$0xff]  ;;  %p179_p3 = por %p178_p2, %p177_p1 }
   0xa   :  { %166 = vmatmul.mubr.msk.f32.vlgmr.msra.gmra.mxu0 %vm19_vm0, %v25_v6 }
   0xb   :  { %p180_p4 = pnand %p179_p3, %p173_p0 }
  0xca   :  { %v167_v8 = vpop.f32.mrf.mxu0 }
  0xcb   :  { %v113_v10 = vadd.f32 %v167_v8, %v23_v7 }
  0xcc   :  { %v103_v11 = vpop.f32.mrf.mxu0 }
  0xcd   :  { %115 = vst.msk [vmem:[#allocation2 + $0x8] sm:$0xff] %vm19_vm0, %v113_v10  ;;  %v112_v12 = vadd.f32 %v103_v11, %v22_v9 }
  0xcf   :  { %114 = vst.msk [vmem:[#allocation2] sm:$0xff] %vm19_vm0, %v112_v12 }
  0xd4   :  { %v120_v14 = vld [vmem:[#allocation2 + $0x8] sm:$0xff] }
  0xd5   :  { %v129_v15 = vadd.f32 %v150_v13, %v120_v14 }
  0xd6   :  { %v119_v16 = vld [vmem:[#allocation2] sm:$0xff] }
  0xd7   :  { %v128_v17 = vadd.f32 %v150_v13, %v119_v16  ;;  %131 = vst.msk [vmem:[#allocation3 + $0x8] sm:$0xff] %vm19_vm0, %v129_v15 }
  0xd9   :  { %130 = vst.msk [vmem:[#allocation3] sm:$0xff] %vm19_vm0, %v128_v17 }
  0xda   :  { %183 = shalt.err (!%p180_p4)
}
  0xdb   :  { %s196_s27 = smov 128   ;;  %s197_s2 = smov 8  }
  0xdc   :  { %143 = dma.vmem_to_hbm [thread:$0]  %s138_s0, 256, %s253_s3, [#allocation4], %s196_s27, %s196_s27, %s197_s2  }
  0xdd   :  { %192 = dma.done.wait [#allocation4], 256  }
  0xde   :  { %193 = vsyncadd [#allocation4], 4294967040 }
  0xdf   :  { %147 = vsyncpa [#allocation4], 1 }

</bundles_post_ra>
